<compile_context>
chip_gen: v7x
topology: tpu7x:2x2x1
jax: 0.10.0
libtpu: 0.0.40
codegen_flags: <defaults>
</compile_context>

<pallas_src>
import functools

import jax
import jax.numpy as jnp
from jax.experimental import pallas as pl
from jax.experimental.pallas import tpu as pltpu


def _round_up(a, m):
    return ((a + m - 1) // m) * m


# -----------------------------------------------------------------------------
# Kernel
# -----------------------------------------------------------------------------
def _init_corrected_kernel(x_ref,
                           w_in_ref, b_in_ref,
                           w_h1_ref, b_h1_ref,
                           w_h2_ref, b_h2_ref,
                           w_out_ref, b_out_ref,
                           o_ref):
    mm_dtype = w_in_ref.dtype                  # f32 or bf16 (set by wrapper)
    H = w_h1_ref.shape[-1]

    x = x_ref[...].astype(mm_dtype)

    # Layer 1, fused across the three parameter sets (shared input x):
    # one (TB, D_in) x (D_in, 3H) matmul instead of three.
    h0 = jnp.dot(x, w_in_ref[...], preferred_element_type=jnp.float32)
    h0 = jnp.maximum(h0 + b_in_ref[...], 0.0)  # (TB, 3H), f32

    # Hidden layers, per branch (kept as 3 dots each — block-diagonal weights
    # would waste MXU depth).  Static unroll over the three parameter sets.
    hs = []
    for k in range(3):
        h = h0[:, k * H:(k + 1) * H].astype(mm_dtype)
        h = jnp.dot(h, w_h1_ref[k], preferred_element_type=jnp.float32)
        h = jnp.maximum(h + b_h1_ref[k], 0.0)
        h = h.astype(mm_dtype)
        h = jnp.dot(h, w_h2_ref[k], preferred_element_type=jnp.float32)
        h = jnp.maximum(h + b_h2_ref[k], 0.0)
        hs.append(h)

    # Output layer fused with the (+1,-1,+1) combination: signs are already
    # folded into w_out/b_out, so a single (TB,3H)x(3H,D_out_pad) matmul yields
    # the final (lane-dense, padded) result.
    h_cat = jnp.concatenate(hs, axis=-1).astype(mm_dtype)   # (TB, 3H)
    y = jnp.dot(h_cat, w_out_ref[...], preferred_element_type=jnp.float32)
    o_ref[...] = (y + b_out_ref[...]).astype(o_ref.dtype)


# -----------------------------------------------------------------------------
# Wrapper
# -----------------------------------------------------------------------------
@functools.partial(jax.jit, static_argnames=("matmul_dtype", "tile_b_max"))
def init_corrected_forward(x, params, *, matmul_dtype=jnp.float32,
                           tile_b_max=512):
    """params: dict of stacked weights/biases, leading axis 3 =
    (scaled, init_scaled, init), weights stored [in, out]."""
    f32 = jnp.float32
    B, D_in = x.shape
    H = params["w_h1"].shape[-1]
    D_out = params["w_out"].shape[-1]
    D_out_pad = _round_up(D_out, 128)            # lane-dense output store

    # ---- fold the 3 branches into fused first/last layers (wrapper-side) ----
    w_in_cat = jnp.concatenate([params["w_in"][k] for k in range(3)],
                               axis=-1).astype(matmul_dtype)       # (D_in, 3H)
    b_in_cat = jnp.concatenate([params["b_in"][k] for k in range(3)],
                               axis=-1).astype(f32)                # (1, 3H)
    w_h1 = params["w_h1"].astype(matmul_dtype)                     # (3, H, H)
    w_h2 = params["w_h2"].astype(matmul_dtype)                     # (3, H, H)
    b_h1 = params["b_h1"].astype(f32)                              # (3, 1, H)
    b_h2 = params["b_h2"].astype(f32)                              # (3, 1, H)

    signs = (1.0, -1.0, 1.0)
    w_out_signed = jnp.concatenate(
        [signs[k] * params["w_out"][k] for k in range(3)], axis=0)  # (3H, D_out)
    b_out_comb = (params["b_out"][0] - params["b_out"][1]
                  + params["b_out"][2])                             # (1, D_out)
    w_out_signed = jnp.pad(
        w_out_signed, ((0, 0), (0, D_out_pad - D_out))).astype(matmul_dtype)
    b_out_comb = jnp.pad(
        b_out_comb, ((0, 0), (0, D_out_pad - D_out))).astype(f32)

    # ---- batch tiling ----
    B_pad = _round_up(B, 8)
    tile_b = min(tile_b_max, B_pad)
    B_pad = _round_up(B_pad, tile_b)
    if B_pad != B:
        x = jnp.pad(x, ((0, B_pad - B), (0, 0)))
    grid = (B_pad // tile_b,)

    out = pl.pallas_call(
        _init_corrected_kernel,
        out_shape=jax.ShapeDtypeStruct((B_pad, D_out_pad), jnp.float32),
        grid_spec=pltpu.PrefetchScalarGridSpec(
            num_scalar_prefetch=0,
            grid=grid,
            in_specs=[
                pl.BlockSpec((tile_b, D_in), lambda i: (i, 0)),
                # weights / biases: constant index_map -> VMEM-resident
                pl.BlockSpec((D_in, 3 * H), lambda i: (0, 0)),
                pl.BlockSpec((1, 3 * H), lambda i: (0, 0)),
                pl.BlockSpec((3, H, H), lambda i: (0, 0, 0)),
                pl.BlockSpec((3, 1, H), lambda i: (0, 0, 0)),
                pl.BlockSpec((3, H, H), lambda i: (0, 0, 0)),
                pl.BlockSpec((3, 1, H), lambda i: (0, 0, 0)),
                pl.BlockSpec((3 * H, D_out_pad), lambda i: (0, 0)),
                pl.BlockSpec((1, D_out_pad), lambda i: (0, 0)),
            ],
            out_specs=pl.BlockSpec((tile_b, D_out_pad), lambda i: (i, 0)),
        ),
        compiler_params=pltpu.CompilerParams(
            dimension_semantics=("parallel",)),
    )(x, w_in_cat, b_in_cat, w_h1, b_h1, w_h2, b_h2, w_out_signed, b_out_comb)

    return out[:B, :D_out]


# -----------------------------------------------------------------------------
# Pure-JAX reference (matches the PyTorch forward exactly)
# -----------------------------------------------------------------------------
def _mlp_ref(x, w_in, b_in, w_h1, b_h1, w_h2, b_h2, w_out, b_out):
    h = jnp.maximum(x @ w_in + b_in, 0.0)
    h = jnp.maximum(h @ w_h1 + b_h1, 0.0)
    h = jnp.maximum(h @ w_h2 + b_h2, 0.0)
    return h @ w_out + b_out


def init_corrected_ref(x, p):
    outs = []
    for k in range(3):
        outs.append(_mlp_ref(x,
                             p["w_in"][k], p["b_in"][k, 0],
                             p["w_h1"][k], p["b_h1"][k, 0],
                             p["w_h2"][k], p["b_h2"][k, 0],
                             p["w_out"][k], p["b_out"][k, 0]))
    return outs[0] - outs[1] + outs[2]


def make_params(key, d_in, hidden, d_out):
    """Deterministic synthetic params; the three sets (scaled, init_scaled,
    init) are distinct copies, mimicking a trained vs init model."""
    ks = jax.random.split(key, 8)
    scale = 0.1

    def stack3(k, shape):
        sub = jax.random.split(k, 3)
        return jnp.stack([scale * jax.random.normal(sub[i], shape, jnp.float32)
                          for i in range(3)])

    return {
        "w_in":  stack3(ks[0], (d_in, hidden)),
        "b_in":  stack3(ks[1], (1, hidden)),
        "w_h1":  stack3(ks[2], (hidden, hidden)),
        "b_h1":  stack3(ks[3], (1, hidden)),
        "w_h2":  stack3(ks[4], (hidden, hidden)),
        "b_h2":  stack3(ks[5], (1, hidden)),
        "w_out": stack3(ks[6], (hidden, d_out)),
        "b_out": stack3(ks[7], (1, d_out)),
    }


if __name__ == "__main__":
    B, D_IN, HIDDEN, D_OUT = 8, 32, 128, 8
    key = jax.random.PRNGKey(0)
    kx, kp = jax.random.split(key)
    x = jax.random.normal(kx, (B, D_IN), jnp.float32)
    params = make_params(kp, D_IN, HIDDEN, D_OUT)

    ref = init_corrected_ref(x, params)

    # f32 matmul path (bit-faithful to the module's forward numerics)
    out_f32 = jax.block_until_ready(
        init_corrected_forward(x, params, matmul_dtype=jnp.float32))
    assert out_f32.shape == (B, D_OUT)
    assert jnp.allclose(out_f32, ref, atol=1e-3, rtol=1e-3), "f32 mismatch vs reference"

    # bf16 matmul-operand path (v6e/v7x compute lever; f32 accumulation)
    out_bf16 = jax.block_until_ready(
        init_corrected_forward(x, params, matmul_dtype=jnp.bfloat16))
    assert out_bf16.shape == (B, D_OUT)
    assert jnp.allclose(out_bf16, ref, atol=5e-2, rtol=5e-2), "bf16 mismatch vs reference"

    print("KERNEL_OK")
</pallas_src>

<mosaic_0001>
module attributes {stable_mosaic.version = 11 : i64} {
  func.func @_init_corrected_kernel(%arg0: i32, %arg1: memref<8x32xf32, #tpu.memory_space<vmem>>, %arg2: memref<32x384xf32, #tpu.memory_space<vmem>>, %arg3: memref<1x384xf32, #tpu.memory_space<vmem>>, %arg4: memref<3x128x128xf32, #tpu.memory_space<vmem>>, %arg5: memref<3x1x128xf32, #tpu.memory_space<vmem>>, %arg6: memref<3x128x128xf32, #tpu.memory_space<vmem>>, %arg7: memref<3x1x128xf32, #tpu.memory_space<vmem>>, %arg8: memref<384x128xf32, #tpu.memory_space<vmem>>, %arg9: memref<1x128xf32, #tpu.memory_space<vmem>>, %arg10: memref<8x128xf32, #tpu.memory_space<vmem>>) attributes {dimension_semantics = [#tpu.dimension_semantics<parallel>], iteration_bounds = array<i64: 1>, scalar_prefetch = 0 : i64, scratch_operands = 0 : i64, tpu.core_type = #tpu.core_type<tc>, window_params = [{transform_indices = @transform_0, window_bounds = array<i64: 8, 32>}, {pipeline_mode = #tpu.pipeline_mode<synchronous>, transform_indices = @transform_1, window_bounds = array<i64: 32, 384>}, {pipeline_mode = #tpu.pipeline_mode<synchronous>, transform_indices = @transform_2, window_bounds = array<i64: 1, 384>}, {pipeline_mode = #tpu.pipeline_mode<synchronous>, transform_indices = @transform_3, window_bounds = array<i64: 3, 128, 128>}, {pipeline_mode = #tpu.pipeline_mode<synchronous>, transform_indices = @transform_4, window_bounds = array<i64: 3, 1, 128>}, {pipeline_mode = #tpu.pipeline_mode<synchronous>, transform_indices = @transform_5, window_bounds = array<i64: 3, 128, 128>}, {pipeline_mode = #tpu.pipeline_mode<synchronous>, transform_indices = @transform_6, window_bounds = array<i64: 3, 1, 128>}, {pipeline_mode = #tpu.pipeline_mode<synchronous>, transform_indices = @transform_7, window_bounds = array<i64: 384, 128>}, {pipeline_mode = #tpu.pipeline_mode<synchronous>, transform_indices = @transform_8, window_bounds = array<i64: 1, 128>}, {transform_indices = @transform_9, window_bounds = array<i64: 8, 128>}]} {
    %c0 = arith.constant 0 : index
    %c0_0 = arith.constant 0 : index
    %0 = vector.load %arg1[%c0, %c0_0] : memref<8x32xf32, #tpu.memory_space<vmem>>, vector<8x32xf32>
    %c0_1 = arith.constant 0 : index
    %c0_2 = arith.constant 0 : index
    %1 = vector.load %arg2[%c0_1, %c0_2] : memref<32x384xf32, #tpu.memory_space<vmem>>, vector<32x384xf32>
    %cst = arith.constant dense<0.000000e+00> : vector<8x384xf32>
    %2 = tpu.matmul %0, %1, %cst {dimension_numbers = #tpu.dot_dimension_numbers<[1], [0], [0], [1], [0, 0, 1, 1], [], []>} : vector<8x32xf32>, vector<32x384xf32>, vector<8x384xf32> -> vector<8x384xf32>
    %c0_3 = arith.constant 0 : index
    %c0_4 = arith.constant 0 : index
    %3 = vector.load %arg3[%c0_3, %c0_4] : memref<1x384xf32, #tpu.memory_space<vmem>>, vector<1x384xf32>
    %4 = vector.broadcast %3 : vector<1x384xf32> to vector<8x384xf32>
    %5 = arith.addf %2, %4 : vector<8x384xf32>
    %cst_5 = arith.constant 0.000000e+00 : f32
    %6 = vector.broadcast %cst_5 : f32 to vector<8x384xf32>
    %7 = arith.maximumf %5, %6 : vector<8x384xf32>
    %8 = vector.extract_strided_slice %7 {offsets = [0, 0], sizes = [8, 128], strides = [1, 1]} : vector<8x384xf32> to vector<8x128xf32>
    %c0_6 = arith.constant 0 : index
    %c0_7 = arith.constant 0 : index
    %c0_8 = arith.constant 0 : index
    %9 = vector.load %arg4[%c0_6, %c0_7, %c0_8] : memref<3x128x128xf32, #tpu.memory_space<vmem>>, vector<1x128x128xf32>
    %10 = vector.shape_cast %9 : vector<1x128x128xf32> to vector<128x128xf32>
    %cst_9 = arith.constant dense<0.000000e+00> : vector<8x128xf32>
    %11 = tpu.matmul %8, %10, %cst_9 {dimension_numbers = #tpu.dot_dimension_numbers<[1], [0], [0], [1], [0, 0, 1, 1], [], []>} : vector<8x128xf32>, vector<128x128xf32>, vector<8x128xf32> -> vector<8x128xf32>
    %c0_10 = arith.constant 0 : index
    %c0_11 = arith.constant 0 : index
    %c0_12 = arith.constant 0 : index
    %12 = vector.load %arg5[%c0_10, %c0_11, %c0_12] : memref<3x1x128xf32, #tpu.memory_space<vmem>>, vector<1x1x128xf32>
    %13 = vector.shape_cast %12 : vector<1x1x128xf32> to vector<1x128xf32>
    %14 = vector.broadcast %13 : vector<1x128xf32> to vector<8x128xf32>
    %15 = arith.addf %11, %14 : vector<8x128xf32>
    %cst_13 = arith.constant 0.000000e+00 : f32
    %16 = vector.broadcast %cst_13 : f32 to vector<8x128xf32>
    %17 = arith.maximumf %15, %16 : vector<8x128xf32>
    %c0_14 = arith.constant 0 : index
    %c0_15 = arith.constant 0 : index
    %c0_16 = arith.constant 0 : index
    %18 = vector.load %arg6[%c0_14, %c0_15, %c0_16] : memref<3x128x128xf32, #tpu.memory_space<vmem>>, vector<1x128x128xf32>
    %19 = vector.shape_cast %18 : vector<1x128x128xf32> to vector<128x128xf32>
    %cst_17 = arith.constant dense<0.000000e+00> : vector<8x128xf32>
    %20 = tpu.matmul %17, %19, %cst_17 {dimension_numbers = #tpu.dot_dimension_numbers<[1], [0], [0], [1], [0, 0, 1, 1], [], []>} : vector<8x128xf32>, vector<128x128xf32>, vector<8x128xf32> -> vector<8x128xf32>
    %c0_18 = arith.constant 0 : index
    %c0_19 = arith.constant 0 : index
    %c0_20 = arith.constant 0 : index
    %21 = vector.load %arg7[%c0_18, %c0_19, %c0_20] : memref<3x1x128xf32, #tpu.memory_space<vmem>>, vector<1x1x128xf32>
    %22 = vector.shape_cast %21 : vector<1x1x128xf32> to vector<1x128xf32>
    %23 = vector.broadcast %22 : vector<1x128xf32> to vector<8x128xf32>
    %24 = arith.addf %20, %23 : vector<8x128xf32>
    %cst_21 = arith.constant 0.000000e+00 : f32
    %25 = vector.broadcast %cst_21 : f32 to vector<8x128xf32>
    %26 = arith.maximumf %24, %25 : vector<8x128xf32>
    %27 = vector.extract_strided_slice %7 {offsets = [0, 128], sizes = [8, 128], strides = [1, 1]} : vector<8x384xf32> to vector<8x128xf32>
    %c1 = arith.constant 1 : index
    %c0_22 = arith.constant 0 : index
    %c0_23 = arith.constant 0 : index
    %28 = vector.load %arg4[%c1, %c0_22, %c0_23] : memref<3x128x128xf32, #tpu.memory_space<vmem>>, vector<1x128x128xf32>
    %29 = vector.shape_cast %28 : vector<1x128x128xf32> to vector<128x128xf32>
    %cst_24 = arith.constant dense<0.000000e+00> : vector<8x128xf32>
    %30 = tpu.matmul %27, %29, %cst_24 {dimension_numbers = #tpu.dot_dimension_numbers<[1], [0], [0], [1], [0, 0, 1, 1], [], []>} : vector<8x128xf32>, vector<128x128xf32>, vector<8x128xf32> -> vector<8x128xf32>
    %c1_25 = arith.constant 1 : index
    %c0_26 = arith.constant 0 : index
    %c0_27 = arith.constant 0 : index
    %31 = vector.load %arg5[%c1_25, %c0_26, %c0_27] : memref<3x1x128xf32, #tpu.memory_space<vmem>>, vector<1x1x128xf32>
    %32 = vector.shape_cast %31 : vector<1x1x128xf32> to vector<1x128xf32>
    %33 = vector.broadcast %32 : vector<1x128xf32> to vector<8x128xf32>
    %34 = arith.addf %30, %33 : vector<8x128xf32>
    %cst_28 = arith.constant 0.000000e+00 : f32
    %35 = vector.broadcast %cst_28 : f32 to vector<8x128xf32>
    %36 = arith.maximumf %34, %35 : vector<8x128xf32>
    %c1_29 = arith.constant 1 : index
    %c0_30 = arith.constant 0 : index
    %c0_31 = arith.constant 0 : index
    %37 = vector.load %arg6[%c1_29, %c0_30, %c0_31] : memref<3x128x128xf32, #tpu.memory_space<vmem>>, vector<1x128x128xf32>
    %38 = vector.shape_cast %37 : vector<1x128x128xf32> to vector<128x128xf32>
    %cst_32 = arith.constant dense<0.000000e+00> : vector<8x128xf32>
    %39 = tpu.matmul %36, %38, %cst_32 {dimension_numbers = #tpu.dot_dimension_numbers<[1], [0], [0], [1], [0, 0, 1, 1], [], []>} : vector<8x128xf32>, vector<128x128xf32>, vector<8x128xf32> -> vector<8x128xf32>
    %c1_33 = arith.constant 1 : index
    %c0_34 = arith.constant 0 : index
    %c0_35 = arith.constant 0 : index
    %40 = vector.load %arg7[%c1_33, %c0_34, %c0_35] : memref<3x1x128xf32, #tpu.memory_space<vmem>>, vector<1x1x128xf32>
    %41 = vector.shape_cast %40 : vector<1x1x128xf32> to vector<1x128xf32>
    %42 = vector.broadcast %41 : vector<1x128xf32> to vector<8x128xf32>
    %43 = arith.addf %39, %42 : vector<8x128xf32>
    %cst_36 = arith.constant 0.000000e+00 : f32
    %44 = vector.broadcast %cst_36 : f32 to vector<8x128xf32>
    %45 = arith.maximumf %43, %44 : vector<8x128xf32>
    %46 = vector.extract_strided_slice %7 {offsets = [0, 256], sizes = [8, 128], strides = [1, 1]} : vector<8x384xf32> to vector<8x128xf32>
    %c2 = arith.constant 2 : index
    %c0_37 = arith.constant 0 : index
    %c0_38 = arith.constant 0 : index
    %47 = vector.load %arg4[%c2, %c0_37, %c0_38] : memref<3x128x128xf32, #tpu.memory_space<vmem>>, vector<1x128x128xf32>
    %48 = vector.shape_cast %47 : vector<1x128x128xf32> to vector<128x128xf32>
    %cst_39 = arith.constant dense<0.000000e+00> : vector<8x128xf32>
    %49 = tpu.matmul %46, %48, %cst_39 {dimension_numbers = #tpu.dot_dimension_numbers<[1], [0], [0], [1], [0, 0, 1, 1], [], []>} : vector<8x128xf32>, vector<128x128xf32>, vector<8x128xf32> -> vector<8x128xf32>
    %c2_40 = arith.constant 2 : index
    %c0_41 = arith.constant 0 : index
    %c0_42 = arith.constant 0 : index
    %50 = vector.load %arg5[%c2_40, %c0_41, %c0_42] : memref<3x1x128xf32, #tpu.memory_space<vmem>>, vector<1x1x128xf32>
    %51 = vector.shape_cast %50 : vector<1x1x128xf32> to vector<1x128xf32>
    %52 = vector.broadcast %51 : vector<1x128xf32> to vector<8x128xf32>
    %53 = arith.addf %49, %52 : vector<8x128xf32>
    %cst_43 = arith.constant 0.000000e+00 : f32
    %54 = vector.broadcast %cst_43 : f32 to vector<8x128xf32>
    %55 = arith.maximumf %53, %54 : vector<8x128xf32>
    %c2_44 = arith.constant 2 : index
    %c0_45 = arith.constant 0 : index
    %c0_46 = arith.constant 0 : index
    %56 = vector.load %arg6[%c2_44, %c0_45, %c0_46] : memref<3x128x128xf32, #tpu.memory_space<vmem>>, vector<1x128x128xf32>
    %57 = vector.shape_cast %56 : vector<1x128x128xf32> to vector<128x128xf32>
    %cst_47 = arith.constant dense<0.000000e+00> : vector<8x128xf32>
    %58 = tpu.matmul %55, %57, %cst_47 {dimension_numbers = #tpu.dot_dimension_numbers<[1], [0], [0], [1], [0, 0, 1, 1], [], []>} : vector<8x128xf32>, vector<128x128xf32>, vector<8x128xf32> -> vector<8x128xf32>
    %c2_48 = arith.constant 2 : index
    %c0_49 = arith.constant 0 : index
    %c0_50 = arith.constant 0 : index
    %59 = vector.load %arg7[%c2_48, %c0_49, %c0_50] : memref<3x1x128xf32, #tpu.memory_space<vmem>>, vector<1x1x128xf32>
    %60 = vector.shape_cast %59 : vector<1x1x128xf32> to vector<1x128xf32>
    %61 = vector.broadcast %60 : vector<1x128xf32> to vector<8x128xf32>
    %62 = arith.addf %58, %61 : vector<8x128xf32>
    %cst_51 = arith.constant 0.000000e+00 : f32
    %63 = vector.broadcast %cst_51 : f32 to vector<8x128xf32>
    %64 = arith.maximumf %62, %63 : vector<8x128xf32>
    %65 = tpu.concatenate %26, %45, %64 in 1 : vector<8x128xf32>, vector<8x128xf32>, vector<8x128xf32> -> vector<8x384xf32>
    %c0_52 = arith.constant 0 : index
    %c0_53 = arith.constant 0 : index
    %66 = vector.load %arg8[%c0_52, %c0_53] : memref<384x128xf32, #tpu.memory_space<vmem>>, vector<384x128xf32>
    %cst_54 = arith.constant dense<0.000000e+00> : vector<8x128xf32>
    %67 = tpu.matmul %65, %66, %cst_54 {dimension_numbers = #tpu.dot_dimension_numbers<[1], [0], [0], [1], [0, 0, 1, 1], [], []>} : vector<8x384xf32>, vector<384x128xf32>, vector<8x128xf32> -> vector<8x128xf32>
    %c0_55 = arith.constant 0 : index
    %c0_56 = arith.constant 0 : index
    %68 = vector.load %arg9[%c0_55, %c0_56] : memref<1x128xf32, #tpu.memory_space<vmem>>, vector<1x128xf32>
    %69 = vector.broadcast %68 : vector<1x128xf32> to vector<8x128xf32>
    %70 = arith.addf %67, %69 : vector<8x128xf32>
    %c0_57 = arith.constant 0 : index
    %c0_58 = arith.constant 0 : index
    %71 = vector.load %arg10[%c0_57, %c0_58] : memref<8x128xf32, #tpu.memory_space<vmem>>, vector<8x128xf32>
    tpu.vector_store %arg10[%c0_57, %c0_58], %70 {strides = array<i32>} : memref<8x128xf32, #tpu.memory_space<vmem>>, vector<8x128xf32>,
    return
  }
  func.func @transform_0(%arg0: i32) -> (i32, i32) {
    %c0_i32 = arith.constant 0 : i32
    %c0_i32_0 = arith.constant 0 : i32
    return %arg0, %c0_i32 : i32, i32
  }
  func.func @transform_1(%arg0: i32) -> (i32, i32) {
    %c0_i32 = arith.constant 0 : i32
    %c0_i32_0 = arith.constant 0 : i32
    %c0_i32_1 = arith.constant 0 : i32
    return %c0_i32, %c0_i32_0 : i32, i32
  }
  func.func @transform_2(%arg0: i32) -> (i32, i32) {
    %c0_i32 = arith.constant 0 : i32
    %c0_i32_0 = arith.constant 0 : i32
    %c0_i32_1 = arith.constant 0 : i32
    return %c0_i32, %c0_i32_0 : i32, i32
  }
  func.func @transform_3(%arg0: i32) -> (i32, i32, i32) {
    %c0_i32 = arith.constant 0 : i32
    %c0_i32_0 = arith.constant 0 : i32
    %c0_i32_1 = arith.constant 0 : i32
    %c0_i32_2 = arith.constant 0 : i32
    return %c0_i32, %c0_i32_0, %c0_i32_1 : i32, i32, i32
  }
  func.func @transform_4(%arg0: i32) -> (i32, i32, i32) {
    %c0_i32 = arith.constant 0 : i32
    %c0_i32_0 = arith.constant 0 : i32
    %c0_i32_1 = arith.constant 0 : i32
    %c0_i32_2 = arith.constant 0 : i32
    return %c0_i32, %c0_i32_0, %c0_i32_1 : i32, i32, i32
  }
  func.func @transform_5(%arg0: i32) -> (i32, i32, i32) {
    %c0_i32 = arith.constant 0 : i32
    %c0_i32_0 = arith.constant 0 : i32
    %c0_i32_1 = arith.constant 0 : i32
    %c0_i32_2 = arith.constant 0 : i32
    return %c0_i32, %c0_i32_0, %c0_i32_1 : i32, i32, i32
  }
  func.func @transform_6(%arg0: i32) -> (i32, i32, i32) {
    %c0_i32 = arith.constant 0 : i32
    %c0_i32_0 = arith.constant 0 : i32
    %c0_i32_1 = arith.constant 0 : i32
    %c0_i32_2 = arith.constant 0 : i32
    return %c0_i32, %c0_i32_0, %c0_i32_1 : i32, i32, i32
  }
  func.func @transform_7(%arg0: i32) -> (i32, i32) {
    %c0_i32 = arith.constant 0 : i32
    %c0_i32_0 = arith.constant 0 : i32
    %c0_i32_1 = arith.constant 0 : i32
    return %c0_i32, %c0_i32_0 : i32, i32
  }
  func.func @transform_8(%arg0: i32) -> (i32, i32) {
    %c0_i32 = arith.constant 0 : i32
    %c0_i32_0 = arith.constant 0 : i32
    %c0_i32_1 = arith.constant 0 : i32
    return %c0_i32, %c0_i32_0 : i32, i32
  }
  func.func @transform_9(%arg0: i32) -> (i32, i32) {
    %c0_i32 = arith.constant 0 : i32
    %c0_i32_0 = arith.constant 0 : i32
    return %arg0, %c0_i32 : i32, i32
  }
}

</mosaic_0001>

<bundles_post_ra>
// kernel: init_corrected_forward.1
= control target key start
LH: loop header
LB: loop body
LE: loop exit
PB: predicated region body
PF: predicated region fallthrough
CT: control target
= control target key end

     0   :  { %v1727_v7 = vmov 0.0   ;;  %v1728_v8 = vmov 0.0|0.0   ;;  %vm1729_vm0 = vmmov 0   ;;  %vm63_vm1 = vcmask 261120   ;;  %s2376_s0 = inlined_call_operand.vmem [shape: f32[8,32], index: 0, kind: input, shape index: {}]   ;;  %s2377_s1 = inlined_call_operand.vmem [shape: f32[32,384], index: 1, kind: input, shape index: {}]   ;;  %s2378_s2 = inlined_call_operand.vmem [shape: f32[1,384], index: 2, kind: input, shape index: {}]   ;;  %s2379_s3 = inlined_call_operand.vmem [shape: f32[3,128,128], index: 3, kind: input, shape index: {}]   ;;  %s2380_s4 = inlined_call_operand.vmem [shape: f32[3,1,128], index: 4, kind: input, shape index: {}]   ;;  %s2381_s5 = inlined_call_operand.vmem [shape: f32[3,128,128], index: 5, kind: input, shape index: {}]   ;;  %s2382_s6 = inlined_call_operand.vmem [shape: f32[3,1,128], index: 6, kind: input, shape index: {}]   ;;  %s2383_s7 = inlined_call_operand.vmem [shape: f32[384,128], index: 7, kind: input, shape index: {}]   ;;  %s2384_s8 = inlined_call_operand.vmem [shape: f32[1,128], index: 8, kind: input, shape index: {}]   ;;  %s2385_s9 = inlined_call_operand.hbm [shape: f32[8,128], index: 9, kind: output, shape index: {}]  }
   0x1   :  { %v35_v0 = vld [vmem:[%s2377_s1 + $0x8] sm:$0xff]  ;;  %v38_v1 = vld [vmem:[%s2377_s1 + $0x20] sm:$0xff]  ;;  %v37_v4 = vld [vmem:[%s2377_s1 + $0x18] sm:$0xff]  ;;  %131 = vmatprep.mubr.f32.mxu0 %v1727_v7  ;;  %1493 = vmatprep.subr.bf16.mxu1 %v1728_v8 }
   0x2   :  { %v34_v2 = vld [vmem:[%s2377_s1] sm:$0xff]  ;;  %v1485_v3 = vpack.c.bf16 %v38_v1, %v35_v0  ;;  %v41_v5 = vld [vmem:[%s2377_s1 + $0x38] sm:$0xff]  ;;  %v44_v6 = vld [vmem:[%s2377_s1 + $0x50] sm:$0xff]  ;;  %1237 = vmatprep.mubr.msk.f32.mxu1 %vm1729_vm0, %v1727_v7 }
   0x3   :  { %v1487_v9 = vpack.c.bf16 %v37_v4, %v34_v2  ;;  %v1489_v10 = vpack.c.bf16 %v44_v6, %v41_v5  ;;  %v40_v11 = vld [vmem:[%s2377_s1 + $0x30] sm:$0xff]  ;;  %v43_v12 = vld [vmem:[%s2377_s1 + $0x48] sm:$0xff]  ;;  %v42_v15 = vld [vmem:[%s2377_s1 + $0x40] sm:$0xff] }
   0x4   :  { %1486 = vmatprep.subr.bf16.mxu0 %v1485_v3  ;;  %v36_v13 = vld [vmem:[%s2377_s1 + $0x10] sm:$0xff]  ;;  %v39_v14 = vld [vmem:[%s2377_s1 + $0x28] sm:$0xff]  ;;  %v1491_v16 = vpack.c.bf16 %v43_v12, %v40_v11  ;;  %v45_v18 = vld [vmem:[%s2377_s1 + $0x58] sm:$0xff] }
   0x5   :  { %1488 = vmatpush1.bf16.msra.mxu0 %v1487_v9  ;;  %v1494_v17 = vpack.c.bf16 %v39_v14, %v36_v13  ;;  %v211_v19 = vld [vmem:[%s2379_s3] sm:$0xff]  ;;  %v212_v20 = vld [vmem:[%s2379_s3 + $0x8] sm:$0xff]  ;;  %v1497_v21 = vpack.c.bf16 %v45_v18, %v42_v15  ;;  %v213_v24 = vld [vmem:[%s2379_s3 + $0x10] sm:$0xff] }
   0x6   :  { %1490 = vmatprep.subr.bf16.mxu0 %v1489_v10  ;;  %v33_v22 = vld [vmem:[%s2376_s0] sm:$0xff]  ;;  %v1500_v23 = vpack.c.bf16 %v212_v20, %v211_v19  ;;  %v214_v25 = vld [vmem:[%s2379_s3 + $0x18] sm:$0xff] }
   0x7   :  { %1495 = vmatpush3.bf16.msra.mxu1 %v1494_v17 }
   0x8   :  { %1496 = vmatprep.subr.bf16.mxu1 %v1728_v8 }
   0x9   :  { %1492 = vmatpush1.bf16.msra.mxu0 %v1491_v16 }
   0xa   :  { %1499 = vmatprep.subr.bf16.mxu0 %v1728_v8 }
   0xb   :  { %14 = vsyncpa [#allocation3], 0  ;;  %1498 = vmatpush3.bf16.msra.mxu1 %v1497_v21  ;;  %v1503_v26 = vpack.c.bf16 %v214_v25, %v213_v24  ;;  %v215_v27 = vld [vmem:[%s2379_s3 + $0x20] sm:$0xff]  ;;  %v216_v28 = vld [vmem:[%s2379_s3 + $0x28] sm:$0xff]  ;;  %v48_v45 = vlaneseq  ;;  %s1730_s15 = smov [#allocation2]  }
   0xc   :  { %993 = vmatmul.mubr.msk.f32.vlgmr.msra.gmra.mrb[0].mxu0 %vm63_vm1, %v33_v22  ;;  %1523 = vmatprep.subr.bf16.mxu1 %v1728_v8  ;;  %v1506_v29 = vpack.c.bf16 %v216_v28, %v215_v27  ;;  %v217_v30 = vld [vmem:[%s2379_s3 + $0x30] sm:$0xff]  ;;  %v218_v31 = vld [vmem:[%s2379_s3 + $0x38] sm:$0xff]  ;;  %v219_v33 = vld [vmem:[%s2379_s3 + $0x40] sm:$0xff]  ;;  %s985_s16 = sshll.u32 %s1730_s15, 4  ;;  %s986_s16 = int_to_ptr.vmem [resolvable:$true] %s985_s16 }
   0xd   :  { %1501 = vmatpush3.bf16.msra.mxu0 %v1500_v23  ;;  %1272 = vmatprep.mubr.msk.f32.mxu0 %vm1729_vm0, %v1727_v7  ;;  %v1509_v32 = vpack.c.bf16 %v218_v31, %v217_v30  ;;  %v220_v34 = vld [vmem:[%s2379_s3 + $0x48] sm:$0xff]  ;;  %v221_v36 = vld [vmem:[%s2379_s3 + $0x50] sm:$0xff]  ;;  %v222_v37 = vld [vmem:[%s2379_s3 + $0x58] sm:$0xff]  ;;  %v1887_v46 = vshrl.u32 %v48_v45, 7  ;;  %p1708_p1 = scmp.lt.s32.totalorder %s986_s16, %s986_s16 }
   0xe   :  { %1238 = vmatmul.mubr.msk.f32.vlgmr.msra.gmra.mrb[0].mxu1 %vm63_vm1, %v33_v22  ;;  %1502 = vmatprep.subr.bf16.mxu0 %v1728_v8  ;;  %v1512_v35 = vpack.c.bf16 %v220_v34, %v219_v33  ;;  %v1515_v38 = vpack.c.bf16 %v222_v37, %v221_v36  ;;  %v223_v39 = vld [vmem:[%s2379_s3 + $0x60] sm:$0xff]  ;;  %v224_v40 = vld [vmem:[%s2379_s3 + $0x68] sm:$0xff]  ;;  %v225_v42 = vld [vmem:[%s2379_s3 + $0x70] sm:$0xff] }
   0xf   :  { %1307 = vmatprep.mubr.msk.f32.mxu1 %vm1729_vm0, %v1727_v7  ;;  %v1518_v41 = vpack.c.bf16 %v224_v40, %v223_v39  ;;  %v226_v43 = vld [vmem:[%s2379_s3 + $0x78] sm:$0xff]  ;;  %v58_v47 = vsub.s32 2, %v1887_v46  ;;  %v1893_v48 = vld [vmem:[%s2378_s2] sm:$0x7]  ;;  %v306_v51 = vld [vmem:[%s2381_s5 + $0x8] sm:$0xff]  ;;  %v50_v9 = vsub.s32 0, %v1887_v46 }
  0x10   :  { %v1521_v44 = vpack.c.bf16 %v226_v43, %v225_v42  ;;  %v305_v50 = vld [vmem:[%s2381_s5] sm:$0xff]  ;;  %v307_v52 = vld [vmem:[%s2381_s5 + $0x10] sm:$0xff]  ;;  %v308_v54 = vld [vmem:[%s2381_s5 + $0x18] sm:$0xff]  ;;  %v54_v36 = vsub.s32 1, %v1887_v46 }
  0x11   :  { %1504 = vmatpush3.bf16.msra.mxu0 %v1503_v26  ;;  %v59_v49 = vrot.slane %v1893_v48, %v58_v47  ;;  %v1524_v53 = vpack.c.bf16 %v306_v51, %v305_v50  ;;  %v1527_v55 = vpack.c.bf16 %v308_v54, %v307_v52  ;;  %v309_v56 = vld [vmem:[%s2381_s5 + $0x20] sm:$0xff]  ;;  %v310_v57 = vld [vmem:[%s2381_s5 + $0x28] sm:$0xff]  ;;  %v311_v59 = vld [vmem:[%s2381_s5 + $0x30] sm:$0xff]  ;;  %v51_v10 = vrot.slane %v1893_v48, %v50_v9 }
  0x12   :  { %1505 = vmatprep.subr.bf16.mxu0 %v1728_v8  ;;  %v1530_v58 = vpack.c.bf16 %v310_v57, %v309_v56  ;;  %v312_v60 = vld [vmem:[%s2381_s5 + $0x38] sm:$0xff]  ;;  %v313_v62 = vld [vmem:[%s2381_s5 + $0x40] sm:$0xff]  ;;  %v314_v63 = vld [vmem:[%s2381_s5 + $0x48] sm:$0xff]  ;;  %v55_v40 = vrot.slane %v1893_v48, %v54_v36 }
  0x13   :  { %1525 = vmatpush3.bf16.msra.mxu1 %v1524_v53  ;;  %v1533_v61 = vpack.c.bf16 %v312_v60, %v311_v59  ;;  %v1536_v0 = vpack.c.bf16 %v314_v63, %v313_v62  ;;  %v315_v1 = vld [vmem:[%s2381_s5 + $0x50] sm:$0xff]  ;;  %v316_v2 = vld [vmem:[%s2381_s5 + $0x58] sm:$0xff]  ;;  %v317_v4 = vld [vmem:[%s2381_s5 + $0x60] sm:$0xff] }
  0x14   :  { %1526 = vmatprep.subr.bf16.mxu1 %v1728_v8  ;;  %v1539_v3 = vpack.c.bf16 %v316_v2, %v315_v1  ;;  %v318_v5 = vld [vmem:[%s2381_s5 + $0x68] sm:$0xff]  ;;  %v997_v11 = vld [vmem:[%s2379_s3 + $0x80] sm:$0xff]  ;;  %v999_v19 = vld [vmem:[%s2379_s3 + $0x90] sm:$0xff] }
  0x15   :  { %1507 = vmatpush3.bf16.msra.mxu0 %v1506_v29  ;;  %v1542_v6 = vpack.c.bf16 %v318_v5, %v317_v4  ;;  %v998_v12 = vld [vmem:[%s2379_s3 + $0x88] sm:$0xff]  ;;  %v1000_v20 = vld [vmem:[%s2379_s3 + $0x98] sm:$0xff]  ;;  %v1001_v24 = vld [vmem:[%s2379_s3 + $0xa0] sm:$0xff] }
  0x16   :  { %1508 = vmatprep.subr.bf16.mxu0 %v1728_v8  ;;  %v1548_v16 = vpack.c.bf16 %v998_v12, %v997_v11  ;;  %v1551_v23 = vpack.c.bf16 %v1000_v20, %v999_v19  ;;  %v1002_v25 = vld [vmem:[%s2379_s3 + $0xa8] sm:$0xff]  ;;  %v1003_v27 = vld [vmem:[%s2379_s3 + $0xb0] sm:$0xff]  ;;  %v1004_v28 = vld [vmem:[%s2379_s3 + $0xb8] sm:$0xff] }
  0x17   :  { %1528 = vmatpush3.bf16.msra.mxu1 %v1527_v55  ;;  %v1554_v26 = vpack.c.bf16 %v1002_v25, %v1001_v24  ;;  %v1557_v29 = vpack.c.bf16 %v1004_v28, %v1003_v27  ;;  %v1005_v30 = vld [vmem:[%s2379_s3 + $0xc0] sm:$0xff]  ;;  %v1006_v31 = vld [vmem:[%s2379_s3 + $0xc8] sm:$0xff]  ;;  %v1007_v33 = vld [vmem:[%s2379_s3 + $0xd0] sm:$0xff] }
  0x18   :  { %1529 = vmatprep.subr.bf16.mxu1 %v1728_v8  ;;  %v1008_v34 = vld [vmem:[%s2379_s3 + $0xd8] sm:$0xff]  ;;  %v1009_v37 = vld [vmem:[%s2379_s3 + $0xe0] sm:$0xff]  ;;  %v1034_v46 = vld [vmem:[%s2379_s3 + $0x108] sm:$0xff] }
  0x19   :  { %1510 = vmatpush3.bf16.msra.mxu0 %v1509_v32  ;;  %v1560_v32 = vpack.c.bf16 %v1006_v31, %v1005_v30  ;;  %v1012_v42 = vld [vmem:[%s2379_s3 + $0xf8] sm:$0xff]  ;;  %v1033_v45 = vld [vmem:[%s2379_s3 + $0x100] sm:$0xff]  ;;  %v1038_v53 = vld [vmem:[%s2379_s3 + $0x128] sm:$0xff] }
  0x1a   :  { %1511 = vmatprep.subr.bf16.mxu0 %v1728_v8  ;;  %v1596_v47 = vpack.c.bf16 %v1034_v46, %v1033_v45  ;;  %v1036_v50 = vld [vmem:[%s2379_s3 + $0x118] sm:$0xff]  ;;  %v1037_v52 = vld [vmem:[%s2379_s3 + $0x120] sm:$0xff]  ;;  %v1039_v55 = vld [vmem:[%s2379_s3 + $0x130] sm:$0xff] }
  0x1b   :  { %1531 = vmatpush3.bf16.msra.mxu1 %v1530_v58  ;;  %v1602_v54 = vpack.c.bf16 %v1038_v53, %v1037_v52  ;;  %v1040_v56 = vld [vmem:[%s2379_s3 + $0x138] sm:$0xff]  ;;  %v1041_v58 = vld [vmem:[%s2379_s3 + $0x140] sm:$0xff]  ;;  %v1042_v59 = vld [vmem:[%s2379_s3 + $0x148] sm:$0xff] }
  0x1c   :  { %1532 = vmatprep.subr.bf16.mxu1 %v1728_v8  ;;  %v1605_v57 = vpack.c.bf16 %v1040_v56, %v1039_v55  ;;  %v1608_v60 = vpack.c.bf16 %v1042_v59, %v1041_v58  ;;  %v1044_v62 = vld [vmem:[%s2379_s3 + $0x158] sm:$0xff]  ;;  %v1046_v1 = vld [vmem:[%s2379_s3 + $0x168] sm:$0xff]  ;;  %v319_v9 = vld [vmem:[%s2381_s5 + $0x70] sm:$0xff] }
  0x1d   :  { %1513 = vmatpush3.bf16.msra.mxu0 %v1512_v35  ;;  %v1563_v35 = vpack.c.bf16 %v1008_v34, %v1007_v33  ;;  %v1048_v4 = vld [vmem:[%s2379_s3 + $0x178] sm:$0xff]  ;;  %v995_v12 = vld [vmem:[%s2380_s4] ss:$0 sm:$0xff]  ;;  %v1017_v20 = vld [vmem:[%s2381_s5 + $0x90] sm:$0xff] }
  0x1e   :  { %1514 = vmatprep.subr.bf16.mxu0 %v1728_v8  ;;  %v1020_v24 = vld [vmem:[%s2381_s5 + $0xa8] sm:$0xff]  ;;  %v1022_v27 = vld [vmem:[%s2381_s5 + $0xb8] sm:$0xff]  ;;  %v1055_v52 = vld [vmem:[%s2381_s5 + $0x120] sm:$0xff] }
  0x1f   :  { %1534 = vmatpush3.bf16.msra.mxu1 %v1533_v61  ;;  %v1043_v61 = vld [vmem:[%s2379_s3 + $0x150] sm:$0xff]  ;;  %v1024_v30 = vld [vmem:[%s2381_s5 + $0xc8] sm:$0xff]  ;;  %v1026_v33 = vld [vmem:[%s2381_s5 + $0xd8] sm:$0xff] }
  0x20   :  { %1535 = vmatprep.subr.bf16.mxu1 %v1728_v8  ;;  %v1611_v63 = vpack.c.bf16 %v1044_v62, %v1043_v61  ;;  %v1028_v36 = vld [vmem:[%s2381_s5 + $0xe8] sm:$0xff]  ;;  %v1057_v55 = vld [vmem:[%s2381_s5 + $0x130] sm:$0xff]  ;;  %v1058_v56 = vld [vmem:[%s2381_s5 + $0x138] sm:$0xff] }
  0x21   :  { %1516 = vmatpush3.bf16.msra.mxu0 %v1515_v38  ;;  %v1010_v38 = vld [vmem:[%s2379_s3 + $0xe8] sm:$0xff]  ;;  %v1059_v58 = vld [vmem:[%s2381_s5 + $0x140] sm:$0xff]  ;;  %v1061_v61 = vld [vmem:[%s2381_s5 + $0x150] sm:$0xff] }
  0x22   :  { %1517 = vmatprep.subr.bf16.mxu0 %v1728_v8  ;;  %v1566_v39 = vpack.c.bf16 %v1010_v38, %v1009_v37  ;;  %v1029_v38 = vld [vmem:[%s2381_s5 + $0xf0] sm:$0xff]  ;;  %v1056_v53 = vld [vmem:[%s2381_s5 + $0x128] sm:$0xff]  ;;  %v1062_v62 = vld [vmem:[%s2381_s5 + $0x158] sm:$0xff] }
  0x23   :  { %1537 = vmatpush3.bf16.msra.mxu1 %v1536_v0  ;;  %v1045_v0 = vld [vmem:[%s2379_s3 + $0x160] sm:$0xff]  ;;  %v1060_v59 = vld [vmem:[%s2381_s5 + $0x148] sm:$0xff] }
  0x24   :  { %1538 = vmatprep.subr.bf16.mxu1 %v1728_v8  ;;  %v1614_v2 = vpack.c.bf16 %v1046_v1, %v1045_v0  ;;  %v1063_v0 = vld [vmem:[%s2381_s5 + $0x160] sm:$0xff]  ;;  %v1064_v1 = vld [vmem:[%s2381_s5 + $0x168] sm:$0xff] }
  0x25   :  { %1519 = vmatpush3.bf16.msra.mxu0 %v1518_v41  ;;  %v1011_v41 = vld [vmem:[%s2379_s3 + $0xf0] sm:$0xff] }
  0x26   :  { %1520 = vmatprep.subr.bf16.mxu0 %v1728_v8  ;;  %v1569_v43 = vpack.c.bf16 %v1012_v42, %v1011_v41  ;;  %v1051_v42 = vld [vmem:[%s2381_s5 + $0x100] sm:$0xff] }
  0x27   :  { %1540 = vmatpush3.bf16.msra.mxu1 %v1539_v3  ;;  %v1047_v3 = vld [vmem:[%s2379_s3 + $0x170] sm:$0xff] }
  0x28   :  { %1541 = vmatprep.subr.bf16.mxu1 %v1728_v8  ;;  %v1617_v5 = vpack.c.bf16 %v1048_v4, %v1047_v3  ;;  %v1065_v3 = vld [vmem:[%s2381_s5 + $0x170] sm:$0xff]  ;;  %v1066_v4 = vld [vmem:[%s2381_s5 + $0x178] sm:$0xff] }
  0x29   :  { %1522 = vmatpush3.bf16.msra.mxu0 %v1521_v44 }
  0x2a   :  { %1547 = vmatprep.subr.bf16.mxu0 %v1728_v8 }
  0x2b   :  { %1543 = vmatpush3.bf16.msra.mxu1 %v1542_v6 }
  0x2c   :  { %1544 = vmatprep.subr.bf16.mxu1 %v1728_v8 }
  0xdf   :  { %v133_v13 = vpop.f32.mrb[0].mxu0 }
  0xe0   :  { %v134_v14 = vadd.f32 %v133_v13, %v51_v10  ;;  %v135_v15 = vpop.f32.mrb[1].mxu0  ;;  %v320_v10 = vld [vmem:[%s2381_s5 + $0x78] sm:$0xff]  ;;  %v1015_v13 = vld [vmem:[%s2381_s5 + $0x80] sm:$0xff] }
  0xe1   :  { %v204_v17 = vpop.f32.mrb[0].mxu1  ;;  %v136_v44 = vadd.f32 %v135_v15, %v55_v40  ;;  %v1545_v11 = vpack.c.bf16 %v320_v10, %v319_v9  ;;  %v1014_v40 = vld [vmem:[%s2380_s4 + $0x1] ss:$0 sm:$0xff] }
  0xe2   :  { %v208_v18 = vmax.f32 %v134_v14, 0.0  ;;  %v1959_v21 = vadd.f32 %v204_v17, %v59_v49  ;;  %v1239_v22 = vpop.f32.mrb[1].mxu1  ;;  %v1035_v49 = vld [vmem:[%s2379_s3 + $0x110] sm:$0xff]  ;;  %v1016_v14 = vld [vmem:[%s2381_s5 + $0x88] sm:$0xff] }
  0xe3   :  { %v209_v48 = vmax.f32 %v136_v44, 0.0  ;;  %v1599_v51 = vpack.c.bf16 %v1036_v50, %v1035_v49  ;;  %1546 = vmatpush3.bf16.msra.mxu1 %v1545_v11  ;;  %v1053_v49 = vld [vmem:[%s2381_s5 + $0x110] sm:$0xff]  ;;  %v1054_v50 = vld [vmem:[%s2381_s5 + $0x118] sm:$0xff] }
  0xe4   :  { %1273 = vmatmul.mubr.f32.vlgmr.msra.gmra.mrb[2].mxu0 %v208_v18  ;;  %v210_v6 = vmax.f32 %v1959_v21, 0.0  ;;  %1571 = vmatprep.subr.bf16.mxu1 %v1728_v8  ;;  %v1572_v18 = vpack.c.bf16 %v1016_v14, %v1015_v13  ;;  %v1018_v21 = vld [vmem:[%s2381_s5 + $0x98] sm:$0xff]  ;;  %v799_v13 = vld [vmem:[%s2383_s7 + $0x80] sm:$0xff]  ;;  %v800_v14 = vld [vmem:[%s2383_s7 + $0x88] sm:$0xff] }
  0xe5   :  { %1549 = vmatpush3.bf16.msra.mxu0 %v1548_v16  ;;  %1342 = vmatprep.mubr.msk.f32.mxu0 %vm1729_vm0, %v1727_v7  ;;  %v1575_v22 = vpack.c.bf16 %v1018_v21, %v1017_v20  ;;  %v785_v21 = vld [vmem:[%s2383_s7 + $0x10] sm:$0xff] }
  0xe6   :  { %1550 = vmatprep.subr.bf16.mxu0 %v1728_v8 }
  0xe9   :  { %1552 = vmatpush3.bf16.msra.mxu0 %v1551_v23  ;;  %v1019_v23 = vld [vmem:[%s2381_s5 + $0xa0] sm:$0xff] }
  0xea   :  { %1553 = vmatprep.subr.bf16.mxu0 %v1728_v8  ;;  %v1578_v25 = vpack.c.bf16 %v1020_v24, %v1019_v23  ;;  %v803_v23 = vld [vmem:[%s2383_s7 + $0xa0] sm:$0xff]  ;;  %v804_v24 = vld [vmem:[%s2383_s7 + $0xa8] sm:$0xff] }
  0xed   :  { %1555 = vmatpush3.bf16.msra.mxu0 %v1554_v26  ;;  %v1021_v26 = vld [vmem:[%s2381_s5 + $0xb0] sm:$0xff] }
  0xee   :  { %1556 = vmatprep.subr.bf16.mxu0 %v1728_v8  ;;  %v1581_v28 = vpack.c.bf16 %v1022_v27, %v1021_v26  ;;  %v1651_v26 = vpack.c.bf16 %v804_v24, %v803_v23  ;;  %v787_v27 = vld [vmem:[%s2383_s7 + $0x20] sm:$0xff] }
  0xef   :  { %v996_v23 = vld [vmem:[%s2382_s6] ss:$0 sm:$0xff] }
  0xf1   :  { %1558 = vmatpush3.bf16.msra.mxu0 %v1557_v29  ;;  %v1023_v29 = vld [vmem:[%s2381_s5 + $0xc0] sm:$0xff] }
  0xf2   :  { %1559 = vmatprep.subr.bf16.mxu0 %v1728_v8  ;;  %v1584_v31 = vpack.c.bf16 %v1024_v30, %v1023_v29  ;;  %v805_v29 = vld [vmem:[%s2383_s7 + $0xb0] sm:$0xff]  ;;  %v806_v30 = vld [vmem:[%s2383_s7 + $0xb8] sm:$0xff] }
  0xf5   :  { %1561 = vmatpush3.bf16.msra.mxu0 %v1560_v32  ;;  %v1025_v32 = vld [vmem:[%s2381_s5 + $0xd0] sm:$0xff] }
  0xf6   :  { %1562 = vmatprep.subr.bf16.mxu0 %v1728_v8  ;;  %v1587_v34 = vpack.c.bf16 %v1026_v33, %v1025_v32  ;;  %v1655_v32 = vpack.c.bf16 %v806_v30, %v805_v29  ;;  %v789_v33 = vld [vmem:[%s2383_s7 + $0x30] sm:$0xff]  ;;  %v1068_v30 = vld [vmem:[%s2382_s6 + $0x2] ss:$0 sm:$0xff] }
  0xf9   :  { %1564 = vmatpush3.bf16.msra.mxu0 %v1563_v35  ;;  %v1027_v35 = vld [vmem:[%s2381_s5 + $0xe0] sm:$0xff] }
  0xfa   :  { %1565 = vmatprep.subr.bf16.mxu0 %v1728_v8  ;;  %v1590_v37 = vpack.c.bf16 %v1028_v36, %v1027_v35  ;;  %v807_v35 = vld [vmem:[%s2383_s7 + $0xc0] sm:$0xff]  ;;  %v808_v36 = vld [vmem:[%s2383_s7 + $0xc8] sm:$0xff] }
  0xfd   :  { %1567 = vmatpush3.bf16.msra.mxu0 %v1566_v39  ;;  %v1030_v39 = vld [vmem:[%s2381_s5 + $0xf8] sm:$0xff] }
  0xfe   :  { %1568 = vmatprep.subr.bf16.mxu0 %v1728_v8  ;;  %v1593_v41 = vpack.c.bf16 %v1030_v39, %v1029_v38  ;;  %v1659_v38 = vpack.c.bf16 %v808_v36, %v807_v35  ;;  %v791_v39 = vld [vmem:[%s2383_s7 + $0x40] sm:$0xff] }
 0x101   :  { %1570 = vmatpush3.bf16.msra.mxu0 %v1569_v43  ;;  %v1052_v43 = vld [vmem:[%s2381_s5 + $0x108] sm:$0xff] }
 0x102   :  { %1595 = vmatprep.subr.bf16.mxu0 %v1728_v8 }
 0x104   :  { %1343 = vmatmul.mubr.f32.vlgmr.msra.gmra.mrb[4].mxu0 %v209_v48 }
 0x105   :  { %1597 = vmatpush3.bf16.msra.mxu0 %v1596_v47  ;;  %1412 = vmatprep.mubr.msk.f32.mxu0 %vm1729_vm0, %v1727_v7  ;;  %v1620_v47 = vpack.c.bf16 %v1052_v43, %v1051_v42  ;;  %v810_v42 = vld [vmem:[%s2383_s7 + $0xd8] sm:$0xff] }
 0x106   :  { %1598 = vmatprep.subr.bf16.mxu0 %v1728_v8 }
 0x109   :  { %1600 = vmatpush3.bf16.msra.mxu0 %v1599_v51  ;;  %v1623_v51 = vpack.c.bf16 %v1054_v50, %v1053_v49 }
 0x10a   :  { %1601 = vmatprep.subr.bf16.mxu0 %v1728_v8 }
 0x10d   :  { %1603 = vmatpush3.bf16.msra.mxu0 %v1602_v54  ;;  %v1626_v54 = vpack.c.bf16 %v1056_v53, %v1055_v52  ;;  %v796_v52 = vld [vmem:[%s2383_s7 + $0x68] sm:$0xff] }
 0x10e   :  { %1604 = vmatprep.subr.bf16.mxu0 %v1728_v8 }
 0x111   :  { %1606 = vmatpush3.bf16.msra.mxu0 %v1605_v57  ;;  %v1629_v57 = vpack.c.bf16 %v1058_v56, %v1057_v55  ;;  %v814_v55 = vld [vmem:[%s2383_s7 + $0xf8] sm:$0xff] }
 0x112   :  { %1607 = vmatprep.subr.bf16.mxu0 %v1728_v8 }
 0x115   :  { %1609 = vmatpush3.bf16.msra.mxu0 %v1608_v60  ;;  %v1632_v60 = vpack.c.bf16 %v1060_v59, %v1059_v58  ;;  %v798_v58 = vld [vmem:[%s2383_s7 + $0x78] sm:$0xff] }
 0x116   :  { %1610 = vmatprep.subr.bf16.mxu0 %v1728_v8 }
 0x119   :  { %1612 = vmatpush3.bf16.msra.mxu0 %v1611_v63  ;;  %v1635_v63 = vpack.c.bf16 %v1062_v62, %v1061_v61  ;;  %v816_v61 = vld [vmem:[%s2383_s7 + $0x108] sm:$0xff] }
 0x11a   :  { %1613 = vmatprep.subr.bf16.mxu0 %v1728_v8 }
 0x11d   :  { %1615 = vmatpush3.bf16.msra.mxu0 %v1614_v2  ;;  %v1638_v2 = vpack.c.bf16 %v1064_v1, %v1063_v0  ;;  %v818_v0 = vld [vmem:[%s2383_s7 + $0x118] sm:$0xff] }
 0x11e   :  { %1616 = vmatprep.subr.bf16.mxu0 %v1728_v8 }
 0x121   :  { %1618 = vmatpush3.bf16.msra.mxu0 %v1617_v5  ;;  %v1050_v5 = vld [vmem:[%s2380_s4 + $0x2] ss:$0 sm:$0xff] }
 0x124   :  { %1413 = vmatmul.mubr.f32.vlgmr.msra.gmra.mrb[6].mxu0 %v210_v6  ;;  %v1641_v6 = vpack.c.bf16 %v1066_v4, %v1065_v3  ;;  %v820_v3 = vld [vmem:[%s2383_s7 + $0x128] sm:$0xff] }
 0x1b7   :  { %v300_v15 = vpop.f32.mrb[2].mxu0 }
 0x1b8   :  { %v301_v16 = vadd.f32 %v995_v12, %v300_v15  ;;  %v1274_v17 = vpop.f32.mrb[3].mxu0  ;;  %v783_v15 = vld [vmem:[%s2383_s7] sm:$0xff] }
 0x1b9   :  { %v784_v17 = vld [vmem:[%s2383_s7 + $0x8] sm:$0xff] }
 0x1ba   :  { %v304_v19 = vmax.f32 %v301_v16, 0.0  ;;  %v1643_v16 = vpack.c.bf16 %v800_v14, %v799_v13  ;;  %v825_v13 = vld [vmem:[%s2383_s7 + $0x150] sm:$0xff]  ;;  %v826_v14 = vld [vmem:[%s2383_s7 + $0x158] sm:$0xff] }
 0x1bc   :  { %1308 = vmatmul.mubr.f32.vlgmr.msra.gmra.mrb[2].mxu1 %v304_v19  ;;  %v1645_v19 = vpack.c.bf16 %v784_v17, %v783_v15  ;;  %1644 = vmatprep.subr.bf16.mxu0 %v1643_v16  ;;  %v1691_v15 = vpack.c.bf16 %v826_v14, %v825_v13  ;;  %v827_v16 = vld [vmem:[%s2383_s7 + $0x160] sm:$0xff]  ;;  %v828_v17 = vld [vmem:[%s2383_s7 + $0x168] sm:$0xff] }
 0x1bd   :  { %1573 = vmatpush3.bf16.msra.mxu1 %v1572_v18  ;;  %1377 = vmatprep.mubr.msk.f32.mxu1 %vm1729_vm0, %v1727_v7  ;;  %v802_v18 = vld [vmem:[%s2383_s7 + $0x98] sm:$0xff] }
 0x1be   :  { %1574 = vmatprep.subr.bf16.mxu1 %v1728_v8  ;;  %1646 = vmatpush3.bf16.msra.mxu0 %v1645_v19  ;;  %v830_v19 = vld [vmem:[%s2383_s7 + $0x178] sm:$0xff] }
 0x1c1   :  { %1576 = vmatpush3.bf16.msra.mxu1 %v1575_v22  ;;  %v786_v22 = vld [vmem:[%s2383_s7 + $0x18] sm:$0xff] }
 0x1c2   :  { %1577 = vmatprep.subr.bf16.mxu1 %v1728_v8 }
 0x1c5   :  { %1579 = vmatpush3.bf16.msra.mxu1 %v1578_v25  ;;  %v1649_v25 = vpack.c.bf16 %v786_v22, %v785_v21 }
 0x1c6   :  { %1580 = vmatprep.subr.bf16.mxu1 %v1728_v8 }
 0x1c9   :  { %1582 = vmatpush3.bf16.msra.mxu1 %v1581_v28  ;;  %v788_v28 = vld [vmem:[%s2383_s7 + $0x28] sm:$0xff] }
 0x1ca   :  { %1583 = vmatprep.subr.bf16.mxu1 %v1728_v8 }
 0x1cd   :  { %1585 = vmatpush3.bf16.msra.mxu1 %v1584_v31  ;;  %v1653_v31 = vpack.c.bf16 %v788_v28, %v787_v27 }
 0x1ce   :  { %1586 = vmatprep.subr.bf16.mxu1 %v1728_v8 }
 0x1d1   :  { %1588 = vmatpush3.bf16.msra.mxu1 %v1587_v34  ;;  %v790_v34 = vld [vmem:[%s2383_s7 + $0x38] sm:$0xff] }
 0x1d2   :  { %1589 = vmatprep.subr.bf16.mxu1 %v1728_v8 }
 0x1d5   :  { %1591 = vmatpush3.bf16.msra.mxu1 %v1590_v37  ;;  %v1657_v37 = vpack.c.bf16 %v790_v34, %v789_v33 }
 0x1d6   :  { %1592 = vmatprep.subr.bf16.mxu1 %v1728_v8 }
 0x1d7   :  { %v490_v44 = vpop.f32.mrb[4].mxu0 }
 0x1d8   :  { %v491_v45 = vadd.f32 %v1014_v40, %v490_v44  ;;  %v1344_v46 = vpop.f32.mrb[5].mxu0  ;;  %v792_v40 = vld [vmem:[%s2383_s7 + $0x48] sm:$0xff] }
 0x1d9   :  { %1594 = vmatpush3.bf16.msra.mxu1 %v1593_v41  ;;  %v809_v41 = vld [vmem:[%s2383_s7 + $0xd0] sm:$0xff]  ;;  %v1661_v43 = vpack.c.bf16 %v792_v40, %v791_v39  ;;  %v794_v46 = vld [vmem:[%s2383_s7 + $0x58] sm:$0xff] }
 0x1da   :  { %v494_v48 = vmax.f32 %v491_v45, 0.0  ;;  %1619 = vmatprep.subr.bf16.mxu1 %v1728_v8  ;;  %v1663_v44 = vpack.c.bf16 %v810_v42, %v809_v41  ;;  %v793_v45 = vld [vmem:[%s2383_s7 + $0x50] sm:$0xff] }
 0x1db   :  { %v1665_v49 = vpack.c.bf16 %v794_v46, %v793_v45 }
 0x1dc   :  { %1378 = vmatmul.mubr.f32.vlgmr.msra.gmra.mrb[4].mxu1 %v494_v48  ;;  %v812_v48 = vld [vmem:[%s2383_s7 + $0xe8] sm:$0xff] }
 0x1dd   :  { %1621 = vmatpush3.bf16.msra.mxu1 %v1620_v47  ;;  %1447 = vmatprep.mubr.msk.f32.mxu1 %vm1729_vm0, %v1727_v7  ;;  %v811_v47 = vld [vmem:[%s2383_s7 + $0xe0] sm:$0xff] }
 0x1de   :  { %1622 = vmatprep.subr.bf16.mxu1 %v1728_v8  ;;  %v1667_v50 = vpack.c.bf16 %v812_v48, %v811_v47 }
 0x1e1   :  { %1624 = vmatpush3.bf16.msra.mxu1 %v1623_v51  ;;  %v795_v51 = vld [vmem:[%s2383_s7 + $0x60] sm:$0xff] }
 0x1e2   :  { %1625 = vmatprep.subr.bf16.mxu1 %v1728_v8  ;;  %v1669_v53 = vpack.c.bf16 %v796_v52, %v795_v51 }
 0x1e5   :  { %1627 = vmatpush3.bf16.msra.mxu1 %v1626_v54  ;;  %v813_v54 = vld [vmem:[%s2383_s7 + $0xf0] sm:$0xff] }
 0x1e6   :  { %1628 = vmatprep.subr.bf16.mxu1 %v1728_v8  ;;  %v1671_v56 = vpack.c.bf16 %v814_v55, %v813_v54 }
 0x1e9   :  { %1630 = vmatpush3.bf16.msra.mxu1 %v1629_v57  ;;  %v797_v57 = vld [vmem:[%s2383_s7 + $0x70] sm:$0xff] }
 0x1ea   :  { %1631 = vmatprep.subr.bf16.mxu1 %v1728_v8  ;;  %v1673_v59 = vpack.c.bf16 %v798_v58, %v797_v57 }
 0x1ed   :  { %1633 = vmatpush3.bf16.msra.mxu1 %v1632_v60  ;;  %v815_v60 = vld [vmem:[%s2383_s7 + $0x100] sm:$0xff] }
 0x1ee   :  { %1634 = vmatprep.subr.bf16.mxu1 %v1728_v8  ;;  %v1676_v62 = vpack.c.bf16 %v816_v61, %v815_v60 }
 0x1f1   :  { %1636 = vmatpush3.bf16.msra.mxu1 %v1635_v63  ;;  %v817_v63 = vld [vmem:[%s2383_s7 + $0x110] sm:$0xff] }
 0x1f2   :  { %1637 = vmatprep.subr.bf16.mxu1 %v1728_v8  ;;  %v1679_v1 = vpack.c.bf16 %v818_v0, %v817_v63 }
 0x1f5   :  { %1639 = vmatpush3.bf16.msra.mxu1 %v1638_v2  ;;  %v819_v2 = vld [vmem:[%s2383_s7 + $0x120] sm:$0xff] }
 0x1f6   :  { %1640 = vmatprep.subr.bf16.mxu1 %v1728_v8  ;;  %v1682_v4 = vpack.c.bf16 %v820_v3, %v819_v2 }
 0x1f7   :  { %v682_v9 = vpop.f32.mrb[6].mxu0 }
 0x1f8   :  { %v683_v10 = vadd.f32 %v1050_v5, %v682_v9  ;;  %v1414_v11 = vpop.f32.mrb[7].mxu0  ;;  %v821_v5 = vld [vmem:[%s2383_s7 + $0x130] sm:$0xff] }
 0x1f9   :  { %1642 = vmatpush3.bf16.msra.mxu1 %v1641_v6  ;;  %v822_v6 = vld [vmem:[%s2383_s7 + $0x138] sm:$0xff]  ;;  %v824_v11 = vld [vmem:[%s2383_s7 + $0x148] sm:$0xff] }
 0x1fa   :  { %v686_v12 = vmax.f32 %v683_v10, 0.0  ;;  %1675 = vmatprep.subr.bf16.mxu1 %v1728_v8  ;;  %v1685_v9 = vpack.c.bf16 %v822_v6, %v821_v5  ;;  %v823_v10 = vld [vmem:[%s2383_s7 + $0x140] sm:$0xff] }
 0x1fc   :  { %1448 = vmatmul.mubr.f32.vlgmr.msra.gmra.mrb[6].mxu1 %v686_v12  ;;  %v1688_v12 = vpack.c.bf16 %v824_v11, %v823_v10 }
 0x1fd   :  { %1482 = vmatprep.mubr.msk.f32.mxu1 %vm1729_vm0, %v1727_v7  ;;  %v801_v7 = vld [vmem:[%s2383_s7 + $0x90] sm:$0xff]  ;;  %1677 = vmatpush3.bf16.msra.mxu1 %v1676_v62 }
 0x1fe   :  { %v1647_v20 = vpack.c.bf16 %v802_v18, %v801_v7  ;;  %1678 = vmatprep.subr.bf16.mxu1 %v1728_v8  ;;  %v1694_v7 = vpack.c.bf16 %v828_v17, %v827_v16  ;;  %v829_v18 = vld [vmem:[%s2383_s7 + $0x170] sm:$0xff] }
 0x200   :  { %1648 = vmatprep.subr.bf16.mxu0 %v1647_v20  ;;  %v1697_v20 = vpack.c.bf16 %v830_v19, %v829_v18 }
 0x201   :  { %1650 = vmatpush3.bf16.msra.mxu0 %v1649_v25  ;;  %1680 = vmatpush3.bf16.msra.mxu1 %v1679_v1 }
 0x202   :  { %1652 = vmatprep.subr.bf16.mxu0 %v1651_v26  ;;  %1681 = vmatprep.subr.bf16.mxu1 %v1728_v8 }
 0x205   :  { %1654 = vmatpush3.bf16.msra.mxu0 %v1653_v31  ;;  %1683 = vmatpush3.bf16.msra.mxu1 %v1682_v4 }
 0x206   :  { %1656 = vmatprep.subr.bf16.mxu0 %v1655_v32  ;;  %1684 = vmatprep.subr.bf16.mxu1 %v1728_v8 }
 0x209   :  { %1658 = vmatpush3.bf16.msra.mxu0 %v1657_v37  ;;  %1686 = vmatpush3.bf16.msra.mxu1 %v1685_v9 }
 0x20a   :  { %1660 = vmatprep.subr.bf16.mxu0 %v1659_v38  ;;  %1687 = vmatprep.subr.bf16.mxu1 %v1728_v8  ;;  %v1069_v38 = vld [vmem:[%s2384_s8] ss:$0 sm:$0xff] }
 0x20d   :  { %1662 = vmatpush3.bf16.msra.mxu0 %v1661_v43  ;;  %1689 = vmatpush3.bf16.msra.mxu1 %v1688_v12 }
 0x20e   :  { %1664 = vmatprep.subr.bf16.mxu0 %v1663_v44  ;;  %1690 = vmatprep.subr.bf16.mxu1 %v1728_v8 }
 0x211   :  { %1666 = vmatpush3.bf16.msra.mxu0 %v1665_v49  ;;  %1692 = vmatpush3.bf16.msra.mxu1 %v1691_v15 }
 0x212   :  { %1668 = vmatprep.subr.bf16.mxu0 %v1667_v50  ;;  %1693 = vmatprep.subr.bf16.mxu1 %v1728_v8 }
 0x215   :  { %1670 = vmatpush3.bf16.msra.mxu0 %v1669_v53  ;;  %1695 = vmatpush3.bf16.msra.mxu1 %v1694_v7 }
 0x216   :  { %1672 = vmatprep.subr.bf16.mxu0 %v1671_v56  ;;  %1696 = vmatprep.subr.bf16.mxu1 %v1728_v8  ;;  %v1032_v8 = vld [vmem:[%s2382_s6 + $0x1] ss:$0 sm:$0xff]  ;;  %s1703_s6 = scalar_lea.vmem %s986_s16, 128 }
 0x217   :  { %p1704_p0 = scmp.ne.s32.totalorder %s986_s16, %s1703_s6  ;;  %p1709_p2 = scmp.lt.s32.totalorder %s1703_s6, %s1703_s6 }
 0x219   :  { %1674 = vmatpush3.bf16.msra.mxu0 %v1673_v59  ;;  %1698 = vmatpush3.bf16.msra.mxu1 %v1697_v20  ;;  %p1710_p3 = por %p1709_p2, %p1708_p1 }
 0x21b   :  { %p1711_p4 = pnand %p1710_p3, %p1704_p0 }
 0x28f   :  { %v394_v21 = vpop.f32.mrb[2].mxu1 }
 0x290   :  { %v1309_v22 = vpop.f32.mrb[3].mxu1  ;;  %v395_v24 = vadd.f32 %v996_v23, %v394_v21 }
 0x292   :  { %v398_v29 = vmax.f32 %v395_v24, 0.0 }
 0x2af   :  { %v586_v25 = vpop.f32.mrb[4].mxu1 }
 0x2b0   :  { %v587_v26 = vadd.f32 %v1032_v8, %v586_v25  ;;  %v1379_v27 = vpop.f32.mrb[5].mxu1 }
 0x2b2   :  { %v590_v28 = vmax.f32 %v587_v26, 0.0 }
 0x2b4   :  { %902 = vmatprep.mubr.f32.mxu0 %v590_v28 }
 0x2b5   :  { %903 = vmatmul.mubr.f32.vlgmr.msra.gmra.mrb[8].mxu0 %v398_v29 }
 0x2cf   :  { %v778_v31 = vpop.f32.mrb[6].mxu1 }
 0x2d0   :  { %v779_v32 = vadd.f32 %v1068_v30, %v778_v31  ;;  %v1449_v33 = vpop.f32.mrb[7].mxu1 }
 0x2d2   :  { %v782_v34 = vmax.f32 %v779_v32, 0.0 }
 0x2d4   :  { %1483 = vmatmul.mubr.f32.vlgmr.msra.gmra.mrb[8].mxu1 %v782_v34 }
 0x388   :  { %v1209_v35 = vpop.f32.mrb[8].mxu0 }
 0x389   :  { %v1210_v36 = vpop.f32.mrb[9].mxu0 }
 0x38a   :  { %v1211_v37 = vadd.f32 %v1210_v36, %v1209_v35 }
 0x38c   :  { %v905_v39 = vadd.f32 %v1211_v37, %v1069_v38 }
 0x3a7   :  { %v974_v40 = vpop.f32.mrb[8].mxu1 }
 0x3a8   :  { %v975_v41 = vadd.f32 %v974_v40, %v905_v39  ;;  %v1484_v42 = vpop.f32.mrb[9].mxu1 }
 0x3aa   :  { %978 = vst [vmem:[#allocation2] sm:$0xff] %v975_v41 }
 0x3ab   :  { %1714 = shalt.err (!%p1711_p4)
}
 0x3ac   :  { %s1715_s18 = scalar_lea.hbm %s2385_s9, 128 }
 0x3ad   :  { %p1716_p5 = scmp.ne.s32.totalorder %s2385_s9, %s1715_s18  ;;  %p1719_p6 = scmp.lt.u32.totalorder %s1715_s18, %s2385_s9 }
 0x3af   :  { %p1721_p7 = pnand %p1719_p6, %p1716_p5 }
 0x3b1   :  { %1724 = shalt.err (!%p1721_p7)
}
 0x3b2   :  { %988 = dma.vmem_to_hbm [thread:$0]  %s986_s16, 128, %s2385_s9, [#allocation3]  }
 0x3b3   :  { %1725 = dma.done.wait [#allocation3], 128  }
 0x3b4   :  { %1726 = vsyncadd [#allocation3], 4294967168 }
 0x3b5   :  { %992 = vsyncpa [#allocation3], 1 }

</bundles_post_ra>
